<compile_context>
chip_gen: v5e
topology: v5e:2x2
jax: 0.10.0
libtpu: 0.0.40
codegen_flags: <defaults>
</compile_context>

<pallas_src>
import math

import jax
import jax.numpy as jnp
from jax.experimental import pallas as pl
from jax.experimental.pallas import tpu as pltpu


def _round_up(x: int, m: int) -> int:
    return ((x + m - 1) // m) * m


def _mcrmse_partial_kernel(yp_ref, yt_ref, o_ref, acc_ref):
    """Accumulate lane-wise sum of squared errors over the batch-tile axis."""
    t = pl.program_id(1)

    @pl.when(t == 0)
    def _init():
        acc_ref[...] = jnp.zeros_like(acc_ref)

    d = yp_ref[...].astype(jnp.float32) - yt_ref[...].astype(jnp.float32)
    # Sublane reduce of the (tile_rows, W) tile -> (1, W) lane-dense partial.
    acc_ref[...] += jnp.sum(d * d, axis=0, keepdims=True)

    @pl.when(t == pl.num_programs(1) - 1)
    def _fini():
        o_ref[...] = acc_ref[...]


def _col_sumsq_pallas(y_pred, y_true, *, max_tile_rows=1024):
    """Per-column sum of squared errors, shape (C,), via one streaming pass."""
    bs, c = y_pred.shape
    w = math.lcm(c, 128)          # lane-dense row width (384 for C=6)
    g = w // c                    # samples packed per reshaped row (64 for C=6)

    rows_needed = -(-bs // g)                              # cdiv
    tile_rows = min(max_tile_rows, _round_up(rows_needed, 8))
    num_splits = 2 if rows_needed > tile_rows else 1       # 2 TCs on v7x
    padded_rows = _round_up(rows_needed, tile_rows * num_splits)
    padded_bs = padded_rows * g

    if padded_bs != bs:
        # Zero padding on BOTH inputs -> diff is 0 -> contributes 0 to sumsq;
        # we divide by the true bs at finalize, so padding is exact.
        pad = padded_bs - bs
        y_pred = jnp.pad(y_pred, ((0, pad), (0, 0)))
        y_true = jnp.pad(y_true, ((0, pad), (0, 0)))

    # Row-major reshape is layout-preserving (free): lane j of a row holds
    # sample offset j // C, column j % C.
    yp = y_pred.reshape(padded_rows, w)
    yt = y_true.reshape(padded_rows, w)
    tiles_per_split = padded_rows // (tile_rows * num_splits)

    partial = pl.pallas_call(
        _mcrmse_partial_kernel,
        out_shape=jax.ShapeDtypeStruct((1, num_splits * w), jnp.float32),
        grid_spec=pltpu.PrefetchScalarGridSpec(
            num_scalar_prefetch=0,
            grid=(num_splits, tiles_per_split),
            in_specs=[
                pl.BlockSpec((tile_rows, w),
                             lambda s, t: (s * tiles_per_split + t, 0)),
                pl.BlockSpec((tile_rows, w),
                             lambda s, t: (s * tiles_per_split + t, 0)),
            ],
            # Each split writes its own lane-dense (1, W) block of the output.
            out_specs=pl.BlockSpec((1, w), lambda s, t: (0, s)),
            scratch_shapes=[pltpu.VMEM((1, w), jnp.float32)],
        ),
        compiler_params=pltpu.CompilerParams(
            dimension_semantics=("parallel", "arbitrary"),
            vmem_limit_bytes=32 * 1024 * 1024,  # explicit; safe on v5e/v6e/v7x
        ),
    )(yp, yt)

    # (1, S*W) -> sum splits and fold the W = G*C lanes back to per-column sums.
    # TODO(synk): for bs >> 1e6 consider per-tile partial means for f32 accuracy.
    col_sumsq = partial[0].reshape(num_splits, g, c).sum(axis=(0, 1))
    return col_sumsq


def mcrmse(y_pred: jax.Array, y_true: jax.Array, *,
           min_pallas_batch: int = 1024, max_tile_rows: int = 1024):
    """Fused: returns (scalar MCRMSE loss, per-column RMSE of shape (C,))."""
    bs, c = y_pred.shape
    if bs < min_pallas_batch:
        # Tiny batches: kernel launch/step overhead dominates; XLA's fused
        # reduction is strictly faster.
        sq = (y_pred.astype(jnp.float32) - y_true.astype(jnp.float32)) ** 2
        col_sumsq = sq.sum(axis=0)
    else:
        col_sumsq = _col_sumsq_pallas(y_pred, y_true, max_tile_rows=max_tile_rows)
    rmse = jnp.sqrt(col_sumsq / bs + 1e-07)
    return rmse.mean(), rmse


def mcrmse_loss(y_pred: jax.Array, y_true: jax.Array, **kw) -> jax.Array:
    """Scalar mean column-wise RMSE (matches MCRMSELoss.forward)."""
    return mcrmse(y_pred, y_true, **kw)[0]


def class_mcrmse(y_pred: jax.Array, y_true: jax.Array, **kw) -> jax.Array:
    """Per-column RMSE of shape (C,) (matches MCRMSELoss.class_mcrmse)."""
    return mcrmse(y_pred, y_true, **kw)[1]


def _reference(y_pred, y_true):
    mse = jnp.mean((y_pred.astype(jnp.float32) - y_true.astype(jnp.float32)) ** 2,
                   axis=0)
    rmse = jnp.sqrt(mse + 1e-07)
    return rmse.mean(), rmse


if __name__ == "__main__":
    key = jax.random.PRNGKey(0)
    k1, k2 = jax.random.split(key)
    bs, c = 2000, 6  # not a multiple of 64 -> exercises zero-padding path
    y_pred = jax.random.normal(k1, (bs, c), dtype=jnp.float32)
    y_true = jax.random.normal(k2, (bs, c), dtype=jnp.float32)

    # Force the Pallas path and multiple grid steps + the 2-way split even at
    # this small test size (tile_rows=8 -> grid (2, 2)).
    loss, per_col = mcrmse(y_pred, y_true, min_pallas_batch=0, max_tile_rows=8)
    loss = jax.block_until_ready(loss)
    per_col = jax.block_until_ready(per_col)

    ref_loss, ref_col = _reference(y_pred, y_true)
    assert loss.shape == ()
    assert per_col.shape == (c,)
    assert jnp.allclose(loss, ref_loss, atol=1e-5, rtol=1e-5)
    assert jnp.allclose(per_col, ref_col, atol=1e-5, rtol=1e-5)

    # Module-style wrappers; tiny batch exercises the pure-jnp fallback.
    l_small = jax.block_until_ready(mcrmse_loss(y_pred[:8], y_true[:8]))
    c_small = jax.block_until_ready(class_mcrmse(y_pred[:8], y_true[:8]))
    rl, rc = _reference(y_pred[:8], y_true[:8])
    assert jnp.allclose(l_small, rl, atol=1e-5, rtol=1e-5)
    assert jnp.allclose(c_small, rc, atol=1e-5, rtol=1e-5)

    print("KERNEL_OK")
</pallas_src>

<mosaic_0001>
module attributes {stable_mosaic.version = 11 : i64} {
  func.func @_mcrmse_partial_kernel(%arg0: i32, %arg1: i32, %arg2: memref<8x384xf32, #tpu.memory_space<vmem>>, %arg3: memref<8x384xf32, #tpu.memory_space<vmem>>, %arg4: memref<1x384xf32, #tpu.memory_space<vmem>>, %arg5: memref<1x384xf32, #tpu.memory_space<vmem>>) attributes {dimension_semantics = [#tpu.dimension_semantics<parallel>, #tpu.dimension_semantics<arbitrary>], iteration_bounds = array<i64: 2, 2>, scalar_prefetch = 0 : i64, scratch_operands = 1 : i64, tpu.core_type = #tpu.core_type<tc>, window_params = [{transform_indices = @transform_0, window_bounds = array<i64: 8, 384>}, {transform_indices = @transform_1, window_bounds = array<i64: 8, 384>}, {transform_indices = @transform_2, window_bounds = array<i64: 1, 384>}]} {
    %c0_i32 = arith.constant 0 : i32
    %0 = arith.cmpi eq, %arg1, %c0_i32 : i32
    %1 = arith.extui %0 : i1 to i32
    %c0_i32_0 = arith.constant 0 : i32
    %2 = arith.cmpi ne, %1, %c0_i32_0 : i32
    scf.if %2 {
      %cst_9 = arith.constant 0.000000e+00 : f32
      %15 = vector.broadcast %cst_9 : f32 to vector<1x384xf32>
      %c0_10 = arith.constant 0 : index
      %c0_11 = arith.constant 0 : index
      %16 = vector.load %arg5[%c0_10, %c0_11] : memref<1x384xf32, #tpu.memory_space<vmem>>, vector<1x384xf32>
      tpu.vector_store %arg5[%c0_10, %c0_11], %15 {strides = array<i32>} : memref<1x384xf32, #tpu.memory_space<vmem>>, vector<1x384xf32>,
    } else {
    }
    %c0 = arith.constant 0 : index
    %c0_1 = arith.constant 0 : index
    %3 = vector.load %arg2[%c0, %c0_1] : memref<8x384xf32, #tpu.memory_space<vmem>>, vector<8x384xf32>
    %c0_2 = arith.constant 0 : index
    %c0_3 = arith.constant 0 : index
    %4 = vector.load %arg3[%c0_2, %c0_3] : memref<8x384xf32, #tpu.memory_space<vmem>>, vector<8x384xf32>
    %5 = arith.subf %3, %4 : vector<8x384xf32>
    %c0_4 = arith.constant 0 : index
    %c0_5 = arith.constant 0 : index
    %6 = vector.load %arg5[%c0_4, %c0_5] : memref<1x384xf32, #tpu.memory_space<vmem>>, vector<1x384xf32>
    %7 = arith.mulf %5, %5 : vector<8x384xf32>
    %cst = arith.constant dense<0.000000e+00> : vector<384xf32>
    %8 = vector.multi_reduction <add>, %7, %cst [0] : vector<8x384xf32> to vector<384xf32>
    %9 = vector.shape_cast %8 : vector<384xf32> to vector<1x384xf32>
    %10 = arith.addf %6, %9 : vector<1x384xf32>
    %c0_6 = arith.constant 0 : index
    %c0_7 = arith.constant 0 : index
    %11 = vector.load %arg5[%c0_6, %c0_7] : memref<1x384xf32, #tpu.memory_space<vmem>>, vector<1x384xf32>
    tpu.vector_store %arg5[%c0_6, %c0_7], %10 {strides = array<i32>} : memref<1x384xf32, #tpu.memory_space<vmem>>, vector<1x384xf32>,
    %c1_i32 = arith.constant 1 : i32
    %12 = arith.cmpi eq, %arg1, %c1_i32 : i32
    %13 = arith.extui %12 : i1 to i32
    %c0_i32_8 = arith.constant 0 : i32
    %14 = arith.cmpi ne, %13, %c0_i32_8 : i32
    scf.if %14 {
      %c0_9 = arith.constant 0 : index
      %c0_10 = arith.constant 0 : index
      %15 = vector.load %arg5[%c0_9, %c0_10] : memref<1x384xf32, #tpu.memory_space<vmem>>, vector<1x384xf32>
      %c0_11 = arith.constant 0 : index
      %c0_12 = arith.constant 0 : index
      %16 = vector.load %arg4[%c0_11, %c0_12] : memref<1x384xf32, #tpu.memory_space<vmem>>, vector<1x384xf32>
      tpu.vector_store %arg4[%c0_11, %c0_12], %15 {strides = array<i32>} : memref<1x384xf32, #tpu.memory_space<vmem>>, vector<1x384xf32>,
    } else {
    }
    return
  }
  func.func @transform_0(%arg0: i32, %arg1: i32) -> (i32, i32) {
    %c2_i32 = arith.constant 2 : i32
    %0 = arith.muli %arg0, %c2_i32 : i32
    %1 = arith.addi %0, %arg1 : i32
    %c0_i32 = arith.constant 0 : i32
    %c0_i32_0 = arith.constant 0 : i32
    return %1, %c0_i32 : i32, i32
  }
  func.func @transform_1(%arg0: i32, %arg1: i32) -> (i32, i32) {
    %c2_i32 = arith.constant 2 : i32
    %0 = arith.muli %arg0, %c2_i32 : i32
    %1 = arith.addi %0, %arg1 : i32
    %c0_i32 = arith.constant 0 : i32
    %c0_i32_0 = arith.constant 0 : i32
    return %1, %c0_i32 : i32, i32
  }
  func.func @transform_2(%arg0: i32, %arg1: i32) -> (i32, i32) {
    %c0_i32 = arith.constant 0 : i32
    %c0_i32_0 = arith.constant 0 : i32
    return %c0_i32, %arg0 : i32, i32
  }
}

</mosaic_0001>

<bundles_post_ra>
// kernel: tpu_custom_call.1
= control target key start
LH: loop header
LB: loop body
LE: loop exit
PB: predicated region body
PF: predicated region fallthrough
CT: control target
= control target key end

     0   :  { %7 = vsyncpa [#allocation4], 0  ;;  %s952_s0 = inlined_call_operand.hbm [shape: f32[32,384], index: 0, kind: input, shape index: {}]   ;;  %s953_s1 = inlined_call_operand.hbm [shape: f32[32,384], index: 1, kind: input, shape index: {}]   ;;  %s954_s2 = inlined_call_operand.hbm [shape: f32[1,768], index: 2, kind: output, shape index: {}]  }
   0x1   :  { %9 = vsyncpa [#allocation4 + $0x1], 0 }
   0x2   :  { %10 = vsyncpa [#allocation7], 0 }
   0x3   :  { %12 = vsyncpa [#allocation7 + $0x1], 0 }
   0x4   :  { %13 = vsyncpa [#allocation5], 0 }
   0x5   :  { %15 = vsyncpa [#allocation5 + $0x1], 0  ;;  %s752_s9 = smov 0   ;;  %s754_s10 = smov 0  }
   0x6   :  { %s756_s11 = smov 0   ;;  %s758_s12 = smov 0  }
   0x7   :  { %s760_s13 = smov 0   ;;  %s762_s14 = smov 0  }
   0x8   :  { %s764_s15 = smov 0   ;;  %s766_s16 = smov 0  }
   0x9   :  { %s768_s17 = smov 0   ;;  %s770_s18 = smov 0  }
   0xa   :  { %s772_s19 = smov 0  }
   0xb LB: > { %960 = sst [smem:[#allocation12_spill]] %s714_s14  ;;  %s417_s20 = sadd.s32 4294967295, %s734_s19   ;;  %s734_s19 = sphi %s772_s19, %s21_s19   ;;  %s730_s18 = sphi %s770_s18, %s976_s18   ;;  %s726_s17 = sphi %s768_s17, %s975_s17   ;;  %s722_s16 = sphi %s766_s16, %s974_s16   ;;  %s718_s15 = sphi %s764_s15, %s973_s15   ;;  %s714_s14 = sphi %s762_s14, %s972_s14   ;;  %s710_s13 = sphi %s760_s13, %s981_s13   ;;  %s706_s12 = sphi %s758_s12, %s980_s12   ;;  %s702_s11 = sphi %s756_s11, %s979_s11   ;;  %s698_s10 = sphi %s754_s10, %s978_s10   ;;  %s694_s9 = sphi %s752_s9, %s977_s9  }
   0xc   : > { %961 = sst [smem:[#allocation13_spill]] %s726_s17  ;;  %s418_s21 = sadd.s32 4294967294, %s734_s19  }
   0xd   : > { %962 = sst [smem:[#allocation14_spill]] %s730_s18  ;;  %s30_s22 = sadd.s32 1, %s726_s17 }
   0xe   : > { %s33_s23 = sadd.s32 1, %s730_s18  ;;  %p31_p0 = scmp.ge.s32.totalorder %s30_s22, 2 }
   0xf   : > { %s419_s24 = sshll.u32 %s730_s18, 1  ;;  %s44_s26 = sadd.s32 1, %s714_s14 }
  0x10   : > { %s811_s25 = sadd.s32 %s726_s17, %s419_s24  ;;  %s983_s22 = smov (%p31_p0, %s30_s22), 0 }
  0x11   : > { %963 = sst [smem:[#allocation15_spill]] %s983_s22  ;;  %s985_s23 = smov (!%p31_p0, %s33_s23), %s730_s18 }
  0x12   : > { %p51_p1 = scmp.ne.s32.totalorder %s714_s14, %s710_s13  ;;  %p52_p2 = scmp.eq.s32.totalorder %s734_s19, 0 }
  0x13   : > { %p35_p3 = scmp.ge.s32.totalorder %s985_s23, 2  ;;  %p57_p4 = scmp.ne.s32.totalorder %s710_s13, %s706_s12 }
  0x14   : > { %p821_p5 = por %p52_p2, %p51_p1  ;;  %p58_p6 = scmp.eq.s32.totalorder %s417_s20, 0 }
  0x15   : > { %s987_s23 = smov (%p35_p3, %s985_s23), 0  ;;  %s100_s29 = sadd.s32 1, %s702_s11 }
  0x16   : > { %965 = sst [smem:[#allocation16_spill]] %s987_s23  ;;  %p827_p7 = por %p58_p6, %p57_p4 }
  0x17   : > { %s420_s30 = sshll.u32 %s987_s23, 1  ;;  %s97_s3 = ssub.s32 %s730_s18, %s987_s23 }
  0x18   : > { %s40_s4 = sadd.s32 %s420_s30, %s983_s22  ;;  %p98_p8 = scmp.eq.s32.totalorder %s97_s3, 0 }
  0x19   : > { %s41_s5 = ssub.s32 %s811_s25, %s40_s4  ;;  %p110_p9 = scmp.ne.s32.totalorder %s702_s11, %s698_s10 }
  0x1a   : > { %p42_p10 = scmp.eq.s32.totalorder %s41_s5, 0  ;;  %p111_p11 = scmp.eq.s32.totalorder %s417_s20, 3 }
  0x1b   : > { %s840_s6 = scalar_select %p98_p8, %s702_s11, %s100_s29  }
  0x1c   : > { %s843_s7 = scalar_select %p42_p10, %s714_s14, %s44_s26  }
  0x1d   : > { %p845_p12 = por %p111_p11, %p110_p9  ;;  %p116_p13 = scmp.ne.s32.totalorder %s698_s10, %s694_s9 }
  0x1e   : > { %967 = sst [smem:[#allocation17_spill]] %s843_s7  ;;  %p117_p0 = scmp.eq.s32.totalorder %s418_s21, 3 }
  0x1f   : > { %p457_p1 = scmp.lt.s32.totalorder %s734_s19, 4  ;;  %s137_s12 = sand.u32 1, %s714_s14  }
  0x20   : > { %p855_p2 = por %p117_p0, %p116_p13  ;;  %s434_s30 = smul.u32 24, %s137_s12 }
  0x21   : > { %p861_p3 = pnand %p457_p1, %p821_p5  ;;  %s435_s26 = smul.u32 24, %s811_s25 }
  0x22   : > { %p429_p4 = scmp.ge.s32.totalorder %s734_s19, 1  ;;  %s141_s21 = scalar_lea.vmem [#allocation3], %s434_s30 }
  0x23   : > { %s148_s4 = scalar_lea.hbm %s952_s0, %s435_s26  ;;  %s152_s5 = sshll.u32 %s141_s21, 4  ;;  %s153_s5 = int_to_ptr.vmem [resolvable:$true] %s152_s5 }
  0x24   : > { %s150_s23 = sshll.u32 %s148_s4, 4  ;;  %p179_p6 = scmp.lt.s32.totalorder %s734_s19, 5  ;;  %s151_s23 = int_to_ptr.hbm [resolvable:$true] %s150_s23 }
  0x25   : > { %s138_s22 = scalar_lea.sflag [#allocation4], %s137_s12  ;;  %s170_s25 = scalar_lea.hbm %s953_s1, %s435_s26 }
  0x26   : > { %449 = dma.hbm_to_vmem [thread:$0]  (!%p861_p3), %s151_s23, 384, %s153_s5, %s138_s22  }
  0x27   : > { %p180_p5 = pnand %p429_p4, %p179_p6  ;;  %s172_s17 = sshll.u32 %s170_s25, 4  ;;  %s173_s17 = int_to_ptr.hbm [resolvable:$true] %s172_s17 }
  0x28   : > { %s163_s7 = scalar_lea.vmem [#allocation6], %s434_s30  ;;  %s160_s29 = scalar_lea.sflag [#allocation7], %s137_s12 }
  0x29   : > { %s174_s14 = sshll.u32 %s163_s7, 4  ;;  %183 = sbr.rel (%p180_p5) target bundleno = 110 (0x6e), region = 28  ;;  %s175_s14 = int_to_ptr.vmem [resolvable:$true] %s174_s14 }
  0x2a   : > { %452 = dma.hbm_to_vmem [thread:$0]  (!%p861_p3), %s173_s17, 384, %s175_s14, %s160_s29  }
  0x2b   : > { %s185_s3 = sand.u32 (!%p180_p5), 1, %s710_s13  }
  0x2c   : > { %s438_s4 = smul.u32 (!%p180_p5), 24, %s185_s3  ;;  %s186_s21 = scalar_lea.sflag (!%p180_p5), [#allocation4], %s185_s3 }
  0x2e   : > { %s189_s22 = scalar_lea.vmem [#allocation3], %s438_s4 }
  0x2f   : > { %681 = dma.done.wait (%p827_p7), %s186_s21, 384  }
  0x30   : > { %683 = vsyncadd (%p827_p7), %s186_s21, 4294966912  ;;  %s196_s18 = scalar_lea.sflag [#allocation7], %s185_s3  ;;  %s199_s23 = scalar_lea.vmem [#allocation6], %s438_s4 }
  0x31   : > { %685 = dma.done.wait (%p827_p7), %s196_s18, 384  }
  0x32   : > { %687 = vsyncadd (%p827_p7), %s196_s18, 4294966912  ;;  %s223_s14 = sand.u32 1, %s698_s10   ;;  %p430_p8 = scmp.ne.s32.totalorder %s718_s15, 0 }
  0x33   : > { %s890_s17 = smul.u32 3, %s223_s14 }
  0x34   : > { %234 = sbr.rel (%p430_p8) target bundleno = 61 (0x3d), region = 40 }
  0x35   : > { %s225_s7 = scalar_lea.vmem [#allocation8], %s890_s17 }
  0x39   : > { %v235_v0 = vlaneseq  ;;  %v736_v1 = vmov 0.0  }
  0x3b   : > { %vm237_vm0 = vcmp.lt.s32.totalorder %v235_v0, 384 }
  0x3c   : > { %239 = vst.msk [vmem:[#allocation2] sm:$0x7] %vm237_vm0, %v736_v1 }
  0x3d PF: > { %v240_v2 = vld [vmem:[%s189_s22] sm:$0xff]  ;;  %v241_v3 = vld [vmem:[%s189_s22 + $0x8] sm:$0xff]  ;;  %v242_v4 = vld [vmem:[%s189_s22 + $0x10] sm:$0xff]  ;;  %vm276_vm1 = vcmask 1040384   ;;  %v282_v32 = vlaneseq  ;;  %vm278_vm2 = vcmask 1041408   ;;  %p431_p7 = scmp.ne.s32.totalorder %s718_s15, 1 }
  0x3e   : > { %v243_v5 = vld [vmem:[%s199_s23] sm:$0xff]  ;;  %v244_v6 = vld [vmem:[%s199_s23 + $0x8] sm:$0xff]  ;;  %v245_v7 = vld [vmem:[%s199_s23 + $0x10] sm:$0xff] }
  0x3f   : > { %v246_v8 = vsub.f32 %v240_v2, %v243_v5  ;;  %v247_v9 = vsub.f32 %v241_v3, %v244_v6  ;;  %v248_v10 = vsub.f32 %v242_v4, %v245_v7  ;;  %vm284_vm3 = vcmp.lt.s32.totalorder %v282_v32, 384 }
  0x41   : > { %v250_v11 = vmul.f32 %v246_v8, %v246_v8  ;;  %v251_v12 = vmul.f32 %v247_v9, %v247_v9  ;;  %v252_v13 = vmul.f32 %v248_v10, %v248_v10 }
  0x43   : > { %v253_v14 = vrot.slane %v250_v11, 4  ;;  %v259_v15 = vrot.slane %v251_v12, 4  ;;  %v265_v16 = vrot.slane %v252_v13, 4  ;;  %v249_v35 = vld [vmem:[#allocation2] sm:$0x7] }
  0x45   : > { %v254_v17 = vadd.f32 %v253_v14, %v250_v11  ;;  %v260_v18 = vadd.f32 %v259_v15, %v251_v12  ;;  %v266_v19 = vadd.f32 %v265_v16, %v252_v13 }
  0x47   : > { %v255_v20 = vrot.slane %v254_v17, 2  ;;  %v261_v21 = vrot.slane %v260_v18, 2  ;;  %v267_v22 = vrot.slane %v266_v19, 2 }
  0x49   : > { %v256_v23 = vadd.f32 %v255_v20, %v254_v17  ;;  %v262_v24 = vadd.f32 %v261_v21, %v260_v18  ;;  %v268_v25 = vadd.f32 %v267_v22, %v266_v19 }
  0x4b   : > { %v257_v26 = vrot.slane %v256_v23, 1  ;;  %v263_v27 = vrot.slane %v262_v24, 1  ;;  %v269_v28 = vrot.slane %v268_v25, 1 }
  0x4d   : > { %v258_v29 = vadd.f32 %v257_v26, %v256_v23  ;;  %v264_v30 = vadd.f32 %v263_v27, %v262_v24  ;;  %v270_v31 = vadd.f32 %v269_v28, %v268_v25 }
  0x4f   : > { %v274_v33 = vrot.slane %v264_v30, 7  ;;  %v275_v34 = vrot.slane %v270_v31, 6 }
  0x51   : > { %v277_v36 = vsel %vm276_vm1, %v258_v29, %v274_v33  ;;  %290 = sbr.rel (%p431_p7) target bundleno = 94 (0x5e), region = 44 }
  0x52   : > { %v279_v37 = vsel %vm278_vm2, %v277_v36, %v275_v34 }
  0x53   : > { %v281_v38 = vadd.f32 %v279_v37, %v249_v35 }
  0x55   : > { %286 = vst.msk [vmem:[#allocation2] sm:$0x7] %vm284_vm3, %v281_v38 }
  0x5c   : > { %v291_v39 = vld [vmem:[#allocation2] sm:$0x7] }
  0x5d   : > { %292 = vst.msk [vmem:[%s225_s7] sm:$0x7] %vm284_vm3, %v291_v39 }
  0x5e PF: > { %s301_s28 = smul.u32 3, %s722_s16  ;;  %s306_s12 = sshll.u32 %s225_s7, 4  ;;  %s307_s12 = int_to_ptr.vmem [resolvable:$true] %s306_s12 }
  0x5f   : > { %s294_s15 = scalar_lea.sflag [#allocation5], %s223_s14  ;;  %s628_s3 = scalar_lea.hbm %s954_s2, 6 }
  0x60   : > { %s304_s26 = scalar_lea.hbm %s954_s2, %s301_s28 }
  0x61   : > { %s308_s5 = sshll.u32 %s304_s26, 4  ;;  %s309_s5 = int_to_ptr.hbm [resolvable:$true] %s308_s5 }
  0x62   : > { %s622_s27 = sshra.s32 %s309_s5, 4  ;;  %s623_s27 = int_to_ptr.hbm [resolvable:$true] %s622_s27 }
  0x63   : > { %s624_s25 = scalar_lea.hbm %s623_s27, 3  ;;  %p629_p13 = scmp.lt.s32.totalorder %s623_s27, %s954_s2 }
  0x64   : > { %p625_p9 = scmp.ne.s32.totalorder %s623_s27, %s624_s25  ;;  %p630_p0 = scmp.lt.s32.totalorder %s628_s3, %s624_s25 }
  0x66   : > { %p626_p10 = pnand %p625_p9, %p845_p12  ;;  %p631_p1 = por %p630_p0, %p629_p13 }
  0x68   : > { %p627_p11 = pneg %p626_p10 }
  0x6a   : > { %p632_p3 = pnand %p631_p1, %p627_p11 }
  0x6c   : > { %635 = shalt.err (!%p632_p3)
}
  0x6d   : > { %444 = dma.vmem_to_hbm [thread:$0]  (%p845_p12), %s307_s12, 48, %s309_s5, %s294_s15  }
  0x6e PF: > { %p458_p4 = scmp.ge.s32.totalorder %s734_s19, 2  ;;  %s320_s22 = sand.u32 1, %s694_s9  }
  0x6f   : > { %s321_s18 = scalar_lea.sflag [#allocation5], %s320_s22 }
  0x70   : > { %p454_p6 = pnand %p458_p4, %p855_p2 }
  0x72   : > { %p455_p5 = pneg %p454_p6 }
  0x74   : > { %689 = dma.done.wait (%p455_p5), %s321_s18, 48  }
  0x75   : > { %691 = vsyncadd (%p455_p5), %s321_s18, 4294967248  ;;  %s21_s19 = sadd.s32 1, %s734_s19   ;;  %s971_s8 = sld [smem:[#allocation12_spill]] }
  0x76   : > { %p18_p8 = scmp.ge.s32.totalorder %s21_s19, 6   ;;  %s972_s14 = sld [smem:[#allocation17_spill]] }
  0x77   : > { %s973_s15 = sld [smem:[#allocation13_spill]]  ;;  %s977_s9 = smov %s698_s10 }
  0x78   : > { %s974_s16 = sld [smem:[#allocation14_spill]]  ;;  %s978_s10 = smov %s702_s11 }
  0x79   : > { %s975_s17 = sld [smem:[#allocation15_spill]]  ;;  %s979_s11 = smov %s840_s6 }
  0x7a   : > { %s976_s18 = sld [smem:[#allocation16_spill]]  ;;  %s980_s12 = smov %s710_s13 }
  0x7b   : > { %s981_s13 = smov %s971_s8  ;;  %20 = sbr.rel (!%p18_p8) target bundleno = 11 (0xb), region = 94 }
  0x80   :  { %327 = vsyncpa [#allocation4], 1 }
  0x81   :  { %329 = vsyncpa [#allocation4 + $0x1], 1 }
  0x82   :  { %330 = vsyncpa [#allocation7], 1 }
  0x83   :  { %332 = vsyncpa [#allocation7 + $0x1], 1 }
  0x84   :  { %333 = vsyncpa [#allocation5], 1 }
  0x85   :  { %335 = vsyncpa [#allocation5 + $0x1], 1 }

</bundles_post_ra>
